<compile_context>
chip_gen: v5e
topology: v5e:2x2
jax: 0.10.0
libtpu: 0.0.40
codegen_flags: <defaults>
</compile_context>

<pallas_src>
import jax
import jax.numpy as jnp
from jax.experimental import pallas as pl
from jax.experimental.pallas import tpu as pltpu

_TILE_BUDGET_BYTES = 2 * 1024 * 1024   # per x tile (Pallas double-buffers it)
_VMEM_LIMIT_BYTES = 32 * 1024 * 1024   # safe on v5e/v6e/v7x


def _round_down(v, m):
    return (v // m) * m


def _round_up(v, m):
    return ((v + m - 1) // m) * m


def _sublane_multiple(dtype):
    itemsize = jnp.dtype(dtype).itemsize
    return 8 if itemsize >= 4 else 32 // itemsize   # f32:8, bf16:16, int8/fp8:32


def _tile_rows_cols(rows, cols, itemsize, sublane):
    """Pick (tr, tc): prefer full-width contiguous tiles sized by a byte budget."""
    budget = _TILE_BUDGET_BYTES
    tr_min = rows if rows <= sublane else sublane
    if cols * itemsize * tr_min <= budget:
        # Full-width column tile; grow the row tile to fill the budget.
        tc = cols
        if rows <= sublane:
            tr = rows
        else:
            tr = _round_down(budget // (cols * itemsize), sublane)
            # Keep >= 2 row blocks when possible so both v7x TCs get work.
            half = _round_up(_round_up(rows, 2) // 2, sublane)
            tr = max(sublane, min(tr, half))
            if tr >= rows:
                tr = rows
    else:
        # A single minimum-height row band exceeds the budget: split lanes.
        tr = tr_min
        tc = max(128, _round_down(budget // (tr * itemsize), 128))
        tc = min(tc, cols)
    return tr, tc


def _trelu_kernel(x_ref, b_ref, o_ref):
    # x_ref: (tr, tc); b_ref: (tr, 1) per-row bias OR (1, tc) per-lane bias.
    x = x_ref[...]
    b = b_ref[...].astype(x.dtype)
    o_ref[...] = jnp.where(x > b, x, (0.5 * b).astype(x.dtype))


def _trelu_2d(x2d, b2d, per_row_bias):
    rows, cols = x2d.shape
    itemsize = jnp.dtype(x2d.dtype).itemsize
    sublane = _sublane_multiple(x2d.dtype)
    tr, tc = _tile_rows_cols(rows, cols, itemsize, sublane)
    nr = pl.cdiv(rows, tr)
    nc = pl.cdiv(cols, tc)

    if per_row_bias:
        # Rows outer, cols inner: the (tr, 1) bias block index only changes
        # with the outer axis -> bias streamed exactly once in total.
        grid = (nr, nc)
        x_spec = pl.BlockSpec((tr, tc), lambda i, j: (i, j))
        b_spec = pl.BlockSpec((tr, 1), lambda i, j: (i, 0))
        o_spec = pl.BlockSpec((tr, tc), lambda i, j: (i, j))
    else:
        # Cols outer, rows inner: the (1, tc) per-lane bias block index only
        # changes with the outer axis -> bias streamed exactly once in total.
        grid = (nc, nr)
        x_spec = pl.BlockSpec((tr, tc), lambda j, i: (i, j))
        b_spec = pl.BlockSpec((1, tc), lambda j, i: (0, j))
        o_spec = pl.BlockSpec((tr, tc), lambda j, i: (i, j))

    return pl.pallas_call(
        _trelu_kernel,
        out_shape=jax.ShapeDtypeStruct((rows, cols), x2d.dtype),
        grid=grid,
        in_specs=[x_spec, b_spec],
        out_specs=o_spec,
        compiler_params=pltpu.CompilerParams(
            dimension_semantics=("parallel", "parallel"),
            vmem_limit_bytes=_VMEM_LIMIT_BYTES),
    )(x2d, b2d)


def trelu_conv2d(x, bias):
    """x: (N, C, H, W), bias: (1, C, 1, 1) -> (N, C, H, W). Matches TReLU('conv2d')."""
    N, C, H, W = x.shape
    hw = H * W
    bias = bias.astype(x.dtype)

    if hw % 128 == 0:
        # Lane axis = spatial (already a 128-multiple); tiny per-row bias.
        rows, cols = N * C, hw
        x2d = x.reshape(rows, cols)
        b2d = jnp.broadcast_to(bias.reshape(1, C), (N, C)).reshape(rows, 1)
        out2d = _trelu_2d(x2d, b2d, per_row_bias=True)
    else:
        # Lane-dense fallback: fold channels into the lane axis; per-lane bias
        # is fetched exactly once thanks to the cols-outer grid ordering.
        rows, cols = N, C * hw
        x2d = x.reshape(rows, cols)
        b2d = jnp.broadcast_to(bias.reshape(C, 1), (C, hw)).reshape(1, cols)
        out2d = _trelu_2d(x2d, b2d, per_row_bias=False)

    return out2d.reshape(N, C, H, W)


def _reference(x, bias):
    # Faithful to the original PyTorch formula (computed in f32).
    xf = x.astype(jnp.float32)
    bf = bias.astype(x.dtype).astype(jnp.float32)
    t = jnp.maximum(xf - bf, 0.0)
    return t + bf * (jnp.sign(t) + 1.0) * 0.5


if __name__ == "__main__":
    key = jax.random.PRNGKey(0)
    kx, kb, kx2, kx3 = jax.random.split(key, 4)

    # Non-zero bias so both sides of the select are exercised
    # (the module initializes bias to zeros; values here are arbitrary).
    C = 4
    bias = 0.5 * jax.random.normal(kb, (1, C, 1, 1), dtype=jnp.float32)

    # Case 1: H*W multiple of 128 -> (N*C, H*W) per-row-bias path.
    x = jax.random.normal(kx, (2, C, 16, 16), dtype=jnp.float32)
    y = trelu_conv2d(x, bias)
    jax.block_until_ready(y)
    assert jnp.allclose(y.astype(jnp.float32), _reference(x, bias), atol=1e-6), "mismatch (16x16 f32)"

    # Case 2: H*W not a multiple of 128 -> lane-dense (N, C*H*W) fallback path.
    x_small = jax.random.normal(kx2, (2, C, 7, 7), dtype=jnp.float32)
    y_small = trelu_conv2d(x_small, bias)
    jax.block_until_ready(y_small)
    assert jnp.allclose(y_small.astype(jnp.float32), _reference(x_small, bias), atol=1e-6), "mismatch (7x7 f32)"

    # Case 3: bf16 I/O (halves HBM traffic) with a multi-row-block grid.
    x_bf16 = jax.random.normal(kx3, (2, 64, 16, 16), dtype=jnp.bfloat16)
    bias64 = 0.5 * jax.random.normal(kb, (1, 64, 1, 1), dtype=jnp.float32)
    y_bf16 = trelu_conv2d(x_bf16, bias64)
    jax.block_until_ready(y_bf16)
    assert jnp.allclose(y_bf16.astype(jnp.float32), _reference(x_bf16, bias64), atol=1e-3), "mismatch (bf16)"

    print("KERNEL_OK")
</pallas_src>

<mosaic_0001>
module attributes {stable_mosaic.version = 11 : i64} {
  func.func @_trelu_kernel(%arg0: i32, %arg1: i32, %arg2: memref<8x256xf32, #tpu.memory_space<vmem>>, %arg3: memref<8x1xf32, #tpu.memory_space<vmem>>, %arg4: memref<8x256xf32, #tpu.memory_space<vmem>>) attributes {dimension_semantics = [#tpu.dimension_semantics<parallel>, #tpu.dimension_semantics<parallel>], iteration_bounds = array<i64: 1, 1>, scalar_prefetch = 0 : i64, scratch_operands = 0 : i64, tpu.core_type = #tpu.core_type<tc>, window_params = [{transform_indices = @transform_0, window_bounds = array<i64: 8, 256>}, {transform_indices = @transform_1, window_bounds = array<i64: 8, 1>}, {transform_indices = @transform_2, window_bounds = array<i64: 8, 256>}]} {
    %c0 = arith.constant 0 : index
    %c0_0 = arith.constant 0 : index
    %0 = vector.load %arg2[%c0, %c0_0] : memref<8x256xf32, #tpu.memory_space<vmem>>, vector<8x256xf32>
    %c0_1 = arith.constant 0 : index
    %c0_2 = arith.constant 0 : index
    %1 = vector.load %arg3[%c0_1, %c0_2] : memref<8x1xf32, #tpu.memory_space<vmem>>, vector<8x1xf32>
    %2 = vector.broadcast %1 : vector<8x1xf32> to vector<8x256xf32>
    %3 = arith.cmpf ogt, %0, %2 : vector<8x256xf32>
    %cst = arith.constant 5.000000e-01 : f32
    %4 = vector.broadcast %cst : f32 to vector<8x1xf32>
    %5 = arith.mulf %4, %1 : vector<8x1xf32>
    %6 = vector.shape_cast %5 : vector<8x1xf32> to vector<8x1xf32>
    %7 = vector.broadcast %6 : vector<8x1xf32> to vector<8x256xf32>
    %8 = arith.select %3, %0, %7 : vector<8x256xi1>, vector<8x256xf32>
    %c0_3 = arith.constant 0 : index
    %c0_4 = arith.constant 0 : index
    %9 = vector.load %arg4[%c0_3, %c0_4] : memref<8x256xf32, #tpu.memory_space<vmem>>, vector<8x256xf32>
    tpu.vector_store %arg4[%c0_3, %c0_4], %8 {strides = array<i32>} : memref<8x256xf32, #tpu.memory_space<vmem>>, vector<8x256xf32>,
    return
  }
  func.func @transform_0(%arg0: i32, %arg1: i32) -> (i32, i32) {
    %c0_i32 = arith.constant 0 : i32
    return %arg0, %arg1 : i32, i32
  }
  func.func @transform_1(%arg0: i32, %arg1: i32) -> (i32, i32) {
    %c0_i32 = arith.constant 0 : i32
    %c0_i32_0 = arith.constant 0 : i32
    return %arg0, %c0_i32 : i32, i32
  }
  func.func @transform_2(%arg0: i32, %arg1: i32) -> (i32, i32) {
    %c0_i32 = arith.constant 0 : i32
    return %arg0, %arg1 : i32, i32
  }
}

</mosaic_0001>

<bundles_post_ra>
// kernel: tpu_custom_call.1
= control target key start
LH: loop header
LB: loop body
LE: loop exit
PB: predicated region body
PF: predicated region fallthrough
CT: control target
= control target key end

     0   :  { %7 = vsyncpa [#allocation3], 0  ;;  %s146_s0 = inlined_call_operand.hbm [shape: f32[8,256], index: 0, kind: input, shape index: {}]   ;;  %s147_s1 = inlined_call_operand.vmem [shape: f32[8,1], index: 1, kind: input, shape index: {}]   ;;  %s148_s2 = inlined_call_operand.hbm [shape: f32[8,256], index: 2, kind: output, shape index: {}]  }
   0x1   :  { %8 = vsyncpa [#allocation4], 0  ;;  %s14_s11 = sshll.u32 %s146_s0, 4  ;;  %s119_s12 = smov [#allocation2]   ;;  %s15_s11 = int_to_ptr.hbm [resolvable:$true] %s14_s11 }
   0x2   :  { %s16_s13 = sshll.u32 %s119_s12, 4  ;;  %s17_s13 = int_to_ptr.vmem [resolvable:$true] %s16_s13 }
   0x3   :  { %19 = dma.hbm_to_vmem [thread:$0]  %s15_s11, 256, %s17_s13, [#allocation3]  }
   0x4   :  { %115 = dma.done.wait [#allocation3], 256  }
   0x5   :  { %116 = vsyncadd [#allocation3], 4294967040  ;;  %v120_v0 = vmov 0   ;;  %v28_v1 = vld [vmem:[%s147_s1] sm:$0xff]  ;;  %v27_v5 = vld [vmem:[#allocation2 + $0x8] sm:$0xff]  ;;  %s121_s0 = smov [#allocation5]  }
   0x6   :  { %66 = vset.pattern.permute.xlu0 %v120_v0  ;;  %v36_v2 = vmul.f32 0.5, %v28_v1  ;;  %v26_v4 = vld [vmem:[#allocation2] sm:$0xff]  ;;  %s51_s16 = sshll.u32 %s121_s0, 4  ;;  %s53_s19 = sshll.u32 %s148_s2, 4  ;;  %s52_s16 = int_to_ptr.vmem [resolvable:$true] %s51_s16  ;;  %s54_s19 = int_to_ptr.hbm [resolvable:$true] %s53_s19 }
   0x7   :  { %31 = vperm.xlu0 %66, %v28_v1  }
   0xf   :  { %39 = vperm.xlu0 %66, %v36_v2  }
  0x79   :  { %v32_v3 = vpop.permute.xlu0 %31 }
  0x7a   :  { %vm34_vm0 = vcmp.gt.f32.partialorder %v26_v4, %v32_v3  ;;  %vm35_vm1 = vcmp.gt.f32.partialorder %v27_v5, %v32_v3 }
  0x81   :  { %v40_v6 = vpop.permute.xlu0 %39 }
  0x82   :  { %v42_v7 = vsel %vm34_vm0, %v26_v4, %v40_v6  ;;  %v43_v8 = vsel %vm35_vm1, %v27_v5, %v40_v6 }
  0x83   :  { %44 = vst [vmem:[#allocation5] sm:$0xff] %v42_v7 }
  0x84   :  { %45 = vst [vmem:[#allocation5 + $0x8] sm:$0xff] %v43_v8 }
  0x85   :  { %56 = dma.vmem_to_hbm [thread:$0]  %s52_s16, 256, %s54_s19, [#allocation4]  }
  0x86   :  { %117 = dma.done.wait [#allocation4], 256  }
  0x87   :  { %118 = vsyncadd [#allocation4], 4294967040 }
  0x88   :  { %61 = vsyncpa [#allocation3], 1 }
  0x89   :  { %62 = vsyncpa [#allocation4], 1 }

</bundles_post_ra>
